<compile_context>
chip_gen: v5e
topology: v5e:2x2
jax: 0.10.0
libtpu: 0.0.40
codegen_flags: <defaults>
</compile_context>

<pallas_src>
import jax
import jax.numpy as jnp
from jax.experimental import pallas as pl
from jax.experimental.pallas import tpu as pltpu

IN_FEATURES = 128
HIDDEN = 64
HIDDEN_P = 128        # hidden padded to full lane width (zero columns/rows)
NUM_CLASSES = 10
PADDED_OUT = 128      # lane-dense padded logits width inside the kernel
NEG_BIG = -1e30       # folded log_softmax mask for padded class lanes
TB_MAX = 2048         # max batch-tile rows (~1 MiB per x buffer)


def mlp_kernel(x_ref, w1_ref, b1_ref, w2_ref, b2_ref, o_ref):
    x = x_ref[...]                                               # (tb, 128)

    # fc1 + ReLU (MXU, f32 accumulate). Padded hidden columns stay exactly 0.
    h = jnp.dot(x, w1_ref[...], preferred_element_type=jnp.float32)
    h = jnp.maximum(h + b1_ref[...], 0.0)                        # (tb, 128)

    # fc2 with lane-dense padded N=128. Padded w2 rows/cols are 0; padded b2
    # lanes are -1e30, which folds the log_softmax mask into the bias.
    logits = jnp.dot(h, w2_ref[...], preferred_element_type=jnp.float32)
    logits = logits + b2_ref[...]                                # (tb, 128)

    # log_softmax over 128 lanes: padded lanes are ~-1e30, so they never win
    # the max and exp() underflows to exactly 0 in the sum.
    m = jnp.max(logits, axis=-1, keepdims=True)
    shifted = logits - m
    sum_exp = jnp.sum(jnp.exp(shifted), axis=-1, keepdims=True)
    log_probs = shifted - jnp.log(sum_exp)

    # Store only the NUM_CLASSES valid lanes (masked vst; 40 B/row to HBM).
    o_ref[...] = log_probs[:, :NUM_CLASSES].astype(o_ref.dtype)


def _round_up(n, m):
    return ((n + m - 1) // m) * m


def _choose_tb(B):
    """Batch tile: multiple of 8 (f32 sublane), >= 2 tiles when possible so the
    'parallel' axis shards across v7x's two TensorCores, capped for VMEM."""
    if B < 8:
        return B                      # block == full array dim (allowed)
    half = _round_up(pl.cdiv(B, 2), 8)
    return min(TB_MAX, half)


def my_complex_net2(x, w1, b1, w2, b2):
    """x: (B, 128) float32 -> (B, 10) float32 log-probabilities."""
    B = x.shape[0]
    tb = _choose_tb(B)
    grid = (pl.cdiv(B, tb),)

    # Pad weights once (tiny, VMEM-resident): hidden 64->128 with zeros,
    # output 10->128 with zero weight columns and -1e30 bias lanes.
    w1p = jnp.pad(w1, ((0, 0), (0, HIDDEN_P - HIDDEN)))
    b1p = jnp.pad(b1, ((0, 0), (0, HIDDEN_P - HIDDEN)))
    w2p = jnp.pad(w2, ((0, HIDDEN_P - HIDDEN), (0, PADDED_OUT - NUM_CLASSES)))
    b2p = jnp.pad(b2, ((0, 0), (0, PADDED_OUT - NUM_CLASSES)),
                  constant_values=NEG_BIG)

    out_shape = jax.ShapeDtypeStruct((B, NUM_CLASSES), jnp.float32)

    weight_bytes = (IN_FEATURES * HIDDEN_P + HIDDEN_P
                    + HIDDEN_P * PADDED_OUT + PADDED_OUT) * 4
    cost = pl.CostEstimate(
        flops=2 * B * (IN_FEATURES * HIDDEN_P + HIDDEN_P * PADDED_OUT),
        transcendentals=B * PADDED_OUT,
        bytes_accessed=B * (IN_FEATURES + NUM_CLASSES) * 4 + weight_bytes,
    )

    return pl.pallas_call(
        mlp_kernel,
        out_shape=out_shape,
        grid_spec=pltpu.PrefetchScalarGridSpec(
            num_scalar_prefetch=0,
            grid=grid,
            in_specs=[
                # streamed, double-buffered x tiles (edge block clipped by Pallas)
                pl.BlockSpec((tb, IN_FEATURES), lambda i: (i, 0)),
                # weights/biases: constant index_map -> fetched once, VMEM-resident
                pl.BlockSpec((IN_FEATURES, HIDDEN_P), lambda i: (0, 0)),
                pl.BlockSpec((1, HIDDEN_P), lambda i: (0, 0)),
                pl.BlockSpec((HIDDEN_P, PADDED_OUT), lambda i: (0, 0)),
                pl.BlockSpec((1, PADDED_OUT), lambda i: (0, 0)),
            ],
            # Narrow (tb, 10) output block: last dim equals the full array dim.
            out_specs=pl.BlockSpec((tb, NUM_CLASSES), lambda i: (i, 0)),
        ),
        compiler_params=pltpu.CompilerParams(
            dimension_semantics=("parallel",),
        ),
        cost_estimate=cost,
    )(x, w1p, b1p, w2p, b2p)


def init_params(key):
    """Deterministic init mimicking PyTorch's default Linear init
    (uniform in +-1/sqrt(fan_in)), stored as (in_features, out_features)."""
    k1, k2, k3, k4 = jax.random.split(key, 4)
    bound1 = 1.0 / jnp.sqrt(128.0)
    bound2 = 1.0 / jnp.sqrt(64.0)
    w1 = jax.random.uniform(k1, (128, 64), jnp.float32, -bound1, bound1)
    b1 = jax.random.uniform(k2, (1, 64), jnp.float32, -bound1, bound1)
    w2 = jax.random.uniform(k3, (64, 10), jnp.float32, -bound2, bound2)
    b2 = jax.random.uniform(k4, (1, 10), jnp.float32, -bound2, bound2)
    return w1, b1, w2, b2


if __name__ == "__main__":
    key = jax.random.PRNGKey(0)
    k_x, k_p = jax.random.split(key)

    B = 2
    x = jax.random.normal(k_x, (B, IN_FEATURES), jnp.float32)
    w1, b1, w2, b2 = init_params(k_p)

    fwd = jax.jit(my_complex_net2)
    out = jax.block_until_ready(fwd(x, w1, b1, w2, b2))

    # Sanity check against a pure-JAX reference (PyTorch forward semantics).
    h_ref = jnp.maximum(x @ w1 + b1, 0.0)
    logits_ref = h_ref @ w2 + b2
    ref = jax.nn.log_softmax(logits_ref, axis=1)
    assert out.shape == (B, NUM_CLASSES)
    assert bool(jnp.allclose(out, ref, atol=1e-4)), "mismatch vs reference"

    print("KERNEL_OK")
</pallas_src>

<mosaic_0001>
module attributes {stable_mosaic.version = 11 : i64} {
  func.func @mlp_kernel(%arg0: i32, %arg1: memref<2x128xf32, #tpu.memory_space<vmem>>, %arg2: memref<128x128xf32, #tpu.memory_space<vmem>>, %arg3: memref<1x128xf32, #tpu.memory_space<vmem>>, %arg4: memref<128x128xf32, #tpu.memory_space<vmem>>, %arg5: memref<1x128xf32, #tpu.memory_space<vmem>>, %arg6: memref<2x10xf32, #tpu.memory_space<vmem>>) attributes {dimension_semantics = [#tpu.dimension_semantics<parallel>], iteration_bounds = array<i64: 1>, scalar_prefetch = 0 : i64, scratch_operands = 0 : i64, tpu.core_type = #tpu.core_type<tc>, window_params = [{transform_indices = @transform_0, window_bounds = array<i64: 2, 128>}, {pipeline_mode = #tpu.pipeline_mode<synchronous>, transform_indices = @transform_1, window_bounds = array<i64: 128, 128>}, {pipeline_mode = #tpu.pipeline_mode<synchronous>, transform_indices = @transform_2, window_bounds = array<i64: 1, 128>}, {pipeline_mode = #tpu.pipeline_mode<synchronous>, transform_indices = @transform_3, window_bounds = array<i64: 128, 128>}, {pipeline_mode = #tpu.pipeline_mode<synchronous>, transform_indices = @transform_4, window_bounds = array<i64: 1, 128>}, {transform_indices = @transform_5, window_bounds = array<i64: 2, 10>}]} {
    %c0 = arith.constant 0 : index
    %c0_0 = arith.constant 0 : index
    %0 = vector.load %arg1[%c0, %c0_0] : memref<2x128xf32, #tpu.memory_space<vmem>>, vector<2x128xf32>
    %c0_1 = arith.constant 0 : index
    %c0_2 = arith.constant 0 : index
    %1 = vector.load %arg2[%c0_1, %c0_2] : memref<128x128xf32, #tpu.memory_space<vmem>>, vector<128x128xf32>
    %cst = arith.constant dense<0.000000e+00> : vector<2x128xf32>
    %2 = tpu.matmul %0, %1, %cst {dimension_numbers = #tpu.dot_dimension_numbers<[1], [0], [0], [1], [0, 0, 1, 1], [], []>} : vector<2x128xf32>, vector<128x128xf32>, vector<2x128xf32> -> vector<2x128xf32>
    %c0_3 = arith.constant 0 : index
    %c0_4 = arith.constant 0 : index
    %3 = vector.load %arg3[%c0_3, %c0_4] : memref<1x128xf32, #tpu.memory_space<vmem>>, vector<1x128xf32>
    %4 = vector.broadcast %3 : vector<1x128xf32> to vector<2x128xf32>
    %5 = arith.addf %2, %4 : vector<2x128xf32>
    %cst_5 = arith.constant 0.000000e+00 : f32
    %6 = vector.broadcast %cst_5 : f32 to vector<2x128xf32>
    %7 = arith.maximumf %5, %6 : vector<2x128xf32>
    %c0_6 = arith.constant 0 : index
    %c0_7 = arith.constant 0 : index
    %8 = vector.load %arg4[%c0_6, %c0_7] : memref<128x128xf32, #tpu.memory_space<vmem>>, vector<128x128xf32>
    %cst_8 = arith.constant dense<0.000000e+00> : vector<2x128xf32>
    %9 = tpu.matmul %7, %8, %cst_8 {dimension_numbers = #tpu.dot_dimension_numbers<[1], [0], [0], [1], [0, 0, 1, 1], [], []>} : vector<2x128xf32>, vector<128x128xf32>, vector<2x128xf32> -> vector<2x128xf32>
    %c0_9 = arith.constant 0 : index
    %c0_10 = arith.constant 0 : index
    %10 = vector.load %arg5[%c0_9, %c0_10] : memref<1x128xf32, #tpu.memory_space<vmem>>, vector<1x128xf32>
    %11 = vector.broadcast %10 : vector<1x128xf32> to vector<2x128xf32>
    %12 = arith.addf %9, %11 : vector<2x128xf32>
    %cst_11 = arith.constant dense<0xFF800000> : vector<2xf32>
    %13 = vector.multi_reduction <maximumf>, %12, %cst_11 [1] : vector<2x128xf32> to vector<2xf32>
    %14 = vector.shape_cast %13 : vector<2xf32> to vector<2x1xf32>
    %15 = vector.broadcast %14 : vector<2x1xf32> to vector<2x128xf32>
    %16 = arith.subf %12, %15 : vector<2x128xf32>
    %17 = math.exp %16 : vector<2x128xf32>
    %cst_12 = arith.constant dense<0.000000e+00> : vector<2xf32>
    %18 = vector.multi_reduction <add>, %17, %cst_12 [1] : vector<2x128xf32> to vector<2xf32>
    %19 = vector.shape_cast %18 : vector<2xf32> to vector<2x1xf32>
    %20 = math.log %19 : vector<2x1xf32>
    %21 = vector.broadcast %20 : vector<2x1xf32> to vector<2x128xf32>
    %22 = arith.subf %16, %21 : vector<2x128xf32>
    %23 = vector.extract_strided_slice %22 {offsets = [0, 0], sizes = [2, 10], strides = [1, 1]} : vector<2x128xf32> to vector<2x10xf32>
    %c0_13 = arith.constant 0 : index
    %c0_14 = arith.constant 0 : index
    %24 = vector.load %arg6[%c0_13, %c0_14] : memref<2x10xf32, #tpu.memory_space<vmem>>, vector<2x10xf32>
    tpu.vector_store %arg6[%c0_13, %c0_14], %23 {strides = array<i32>} : memref<2x10xf32, #tpu.memory_space<vmem>>, vector<2x10xf32>,
    return
  }
  func.func @transform_0(%arg0: i32) -> (i32, i32) {
    %c0_i32 = arith.constant 0 : i32
    %c0_i32_0 = arith.constant 0 : i32
    return %arg0, %c0_i32 : i32, i32
  }
  func.func @transform_1(%arg0: i32) -> (i32, i32) {
    %c0_i32 = arith.constant 0 : i32
    %c0_i32_0 = arith.constant 0 : i32
    %c0_i32_1 = arith.constant 0 : i32
    return %c0_i32, %c0_i32_0 : i32, i32
  }
  func.func @transform_2(%arg0: i32) -> (i32, i32) {
    %c0_i32 = arith.constant 0 : i32
    %c0_i32_0 = arith.constant 0 : i32
    %c0_i32_1 = arith.constant 0 : i32
    return %c0_i32, %c0_i32_0 : i32, i32
  }
  func.func @transform_3(%arg0: i32) -> (i32, i32) {
    %c0_i32 = arith.constant 0 : i32
    %c0_i32_0 = arith.constant 0 : i32
    %c0_i32_1 = arith.constant 0 : i32
    return %c0_i32, %c0_i32_0 : i32, i32
  }
  func.func @transform_4(%arg0: i32) -> (i32, i32) {
    %c0_i32 = arith.constant 0 : i32
    %c0_i32_0 = arith.constant 0 : i32
    %c0_i32_1 = arith.constant 0 : i32
    return %c0_i32, %c0_i32_0 : i32, i32
  }
  func.func @transform_5(%arg0: i32) -> (i32, i32) {
    %c0_i32 = arith.constant 0 : i32
    %c0_i32_0 = arith.constant 0 : i32
    return %arg0, %c0_i32 : i32, i32
  }
}

</mosaic_0001>

<bundles_post_ra>
// kernel: my_complex_net2.1
= control target key start
LH: loop header
LB: loop body
LE: loop exit
PB: predicated region body
PF: predicated region fallthrough
CT: control target
= control target key end

     0   :  { %s306_s0 = inlined_call_operand.vmem [shape: f32[2,128], index: 0, kind: input, shape index: {}]   ;;  %s307_s1 = inlined_call_operand.vmem [shape: f32[128,128], index: 1, kind: input, shape index: {}]   ;;  %s308_s2 = inlined_call_operand.vmem [shape: f32[1,128], index: 2, kind: input, shape index: {}]   ;;  %s309_s3 = inlined_call_operand.vmem [shape: f32[128,128], index: 3, kind: input, shape index: {}]   ;;  %s310_s4 = inlined_call_operand.vmem [shape: f32[1,128], index: 4, kind: input, shape index: {}]   ;;  %s311_s5 = inlined_call_operand.hbm [shape: f32[2,10], index: 5, kind: output, shape index: {}]  }
   0x1   :  { %v37_v0 = vld [vmem:[%s307_s1 + $0x78] sm:$0xff]  ;;  %v36_v1 = vld [vmem:[%s307_s1 + $0x70] sm:$0xff]  ;;  %v35_v2 = vld [vmem:[%s307_s1 + $0x68] sm:$0xff] }
   0x2   :  { %42 = vmatpush.msra.mxu0 %v37_v0  ;;  %v34_v3 = vld [vmem:[%s307_s1 + $0x60] sm:$0xff]  ;;  %v78_v4 = vld [vmem:[%s309_s3 + $0x78] sm:$0xff]  ;;  %v77_v6 = vld [vmem:[%s309_s3 + $0x70] sm:$0xff] }
   0x3   :  { %v33_v5 = vld [vmem:[%s307_s1 + $0x58] sm:$0xff]  ;;  %83 = vmatpush.msra.mxu1 %v78_v4  ;;  %v76_v7 = vld [vmem:[%s309_s3 + $0x68] sm:$0xff]  ;;  %v32_v8 = vld [vmem:[%s307_s1 + $0x50] sm:$0xff] }
   0x4   :  { %43 = vmatpush.msra.mxu0 %v36_v1  ;;  %v75_v9 = vld [vmem:[%s309_s3 + $0x60] sm:$0xff]  ;;  %v31_v10 = vld [vmem:[%s307_s1 + $0x48] sm:$0xff]  ;;  %v74_v11 = vld [vmem:[%s309_s3 + $0x58] sm:$0xff] }
   0x5   :  { %84 = vmatpush.msra.mxu1 %v77_v6 }
   0x6   :  { %44 = vmatpush.msra.mxu0 %v35_v2 }
   0x7   :  { %85 = vmatpush.msra.mxu1 %v76_v7 }
   0x8   :  { %45 = vmatpush.msra.mxu0 %v34_v3 }
   0xa   :  { %46 = vmatpush.msra.mxu0 %v33_v5 }
   0xc   :  { %47 = vmatpush.msra.mxu0 %v32_v8 }
   0xd   :  { %10 = vsyncpa [#allocation3], 0  ;;  %v30_v12 = vld [vmem:[%s307_s1 + $0x40] sm:$0xff]  ;;  %86 = vmatpush.msra.mxu1 %v75_v9  ;;  %v73_v13 = vld [vmem:[%s309_s3 + $0x50] sm:$0xff]  ;;  %vm103_vm0 = vcmask 1041408   ;;  %vm116_vm1 = vcmask 74752  }
   0xe   :  { %48 = vmatpush.msra.mxu0 %v31_v10  ;;  %v29_v14 = vld [vmem:[%s307_s1 + $0x38] sm:$0xff]  ;;  %v72_v15 = vld [vmem:[%s309_s3 + $0x48] sm:$0xff]  ;;  %v28_v16 = vld [vmem:[%s307_s1 + $0x30] sm:$0xff] }
   0xf   :  { %87 = vmatpush.msra.mxu1 %v74_v11  ;;  %v71_v17 = vld [vmem:[%s309_s3 + $0x40] sm:$0xff]  ;;  %v27_v18 = vld [vmem:[%s307_s1 + $0x28] sm:$0xff]  ;;  %v70_v19 = vld [vmem:[%s309_s3 + $0x38] sm:$0xff] }
  0x10   :  { %49 = vmatpush.msra.mxu0 %v30_v12  ;;  %v26_v20 = vld [vmem:[%s307_s1 + $0x20] sm:$0xff]  ;;  %v69_v21 = vld [vmem:[%s309_s3 + $0x30] sm:$0xff]  ;;  %v25_v22 = vld [vmem:[%s307_s1 + $0x18] sm:$0xff] }
  0x11   :  { %88 = vmatpush.msra.mxu1 %v73_v13  ;;  %v68_v23 = vld [vmem:[%s309_s3 + $0x28] sm:$0xff]  ;;  %v24_v24 = vld [vmem:[%s307_s1 + $0x10] sm:$0xff]  ;;  %v67_v25 = vld [vmem:[%s309_s3 + $0x20] sm:$0xff] }
  0x12   :  { %50 = vmatpush.msra.mxu0 %v29_v14  ;;  %v23_v26 = vld [vmem:[%s307_s1 + $0x8] sm:$0xff]  ;;  %v66_v27 = vld [vmem:[%s309_s3 + $0x18] sm:$0xff]  ;;  %v22_v28 = vld [vmem:[%s307_s1] sm:$0xff] }
  0x13   :  { %89 = vmatpush.msra.mxu1 %v72_v15  ;;  %v21_v29 = vld [vmem:[%s306_s0] sm:$0x3]  ;;  %v65_v30 = vld [vmem:[%s309_s3 + $0x10] sm:$0xff]  ;;  %v64_v31 = vld [vmem:[%s309_s3 + $0x8] sm:$0xff] }
  0x14   :  { %51 = vmatpush.msra.mxu0 %v28_v16  ;;  %v63_v32 = vld [vmem:[%s309_s3] sm:$0xff] }
  0x15   :  { %90 = vmatpush.msra.mxu1 %v71_v17  ;;  %v135_v33 = vld [vmem:[%s308_s2] ss:$0 sm:$0xff]  ;;  %s167_s2 = smov [#allocation2]  }
  0x16   :  { %52 = vmatpush.msra.mxu0 %v27_v18  ;;  %v136_v37 = vld [vmem:[%s310_s4] ss:$0 sm:$0xff]  ;;  %s123_s3 = sshll.u32 %s167_s2, 4  ;;  %s125_s4 = sshll.u32 %s311_s5, 4  ;;  %s124_s3 = int_to_ptr.vmem [resolvable:$true] %s123_s3  ;;  %s126_s4 = int_to_ptr.hbm [resolvable:$true] %s125_s4 }
  0x17   :  { %91 = vmatpush.msra.mxu1 %v70_v19 }
  0x18   :  { %53 = vmatpush.msra.mxu0 %v26_v20 }
  0x19   :  { %92 = vmatpush.msra.mxu1 %v69_v21 }
  0x1a   :  { %54 = vmatpush.msra.mxu0 %v25_v22 }
  0x1b   :  { %93 = vmatpush.msra.mxu1 %v68_v23 }
  0x1c   :  { %55 = vmatpush.msra.mxu0 %v24_v24 }
  0x1d   :  { %94 = vmatpush.msra.mxu1 %v67_v25 }
  0x1e   :  { %56 = vmatpush.msra.mxu0 %v23_v26 }
  0x1f   :  { %95 = vmatpush.msra.mxu1 %v66_v27 }
  0x20   :  { %57 = vmatpush.msra.mxu0 %v22_v28 }
  0x21   :  { %58 = vmatmul.f32.vlgmr.msra.gmra.mxu0 %v21_v29  ;;  %96 = vmatpush.msra.mxu1 %v65_v30 }
  0x23   :  { %97 = vmatpush.msra.mxu1 %v64_v31 }
  0x25   :  { %98 = vmatpush.msra.mxu1 %v63_v32 }
  0x9e   :  { %v59_v34 = vpop.f32.mrf.mxu0 }
  0x9f   :  { %v60_v35 = vadd.f32 %v135_v33, %v59_v34 }
  0xa1   :  { %v62_v36 = vmax.f32 %v60_v35, 0.0 }
  0xa3   :  { %99 = vmatmul.f32.vlgmr.msra.gmra.mxu1 %v62_v36 }
 0x120   :  { %v100_v38 = vpop.f32.mrf.mxu1 }
 0x121   :  { %v101_v39 = vadd.f32 %v136_v37, %v100_v38 }
 0x123   :  { %v104_v40 = vsel %vm103_vm0, %v101_v39, -inf }
 0x124   :  { %105 = vmax.xlane.f32.xlu0 %v104_v40 }
 0x197   :  { %v106_v41 = vpop.xlane.xlu0 %105 }
 0x198   :  { %v107_v42 = vsub.f32 %v101_v39, %v106_v41 }
 0x19a   :  { %v108_v43 = vmul.f32 1.442695, %v107_v42 }
 0x19c   :  { %137 = vpow2.f32 %v108_v43 }
 0x1a2   :  { %v138_v44 = vpop.eup %137 }
 0x1a3   :  { %v110_v45 = vsel %vm103_vm0, %v138_v44, 0.0 }
 0x1a4   :  { %111 = vadd.xlane.f32.xlu0 %v110_v45 }
 0x217   :  { %v112_v46 = vpop.xlane.xlu0 %111 }
 0x218   :  { %139 = vlog2.f32 %v112_v46 }
 0x21e   :  { %v140_v47 = vpop.eup %139 }
 0x21f   :  { %v114_v48 = vmul.f32 0.6931472, %v140_v47 }
 0x221   :  { %v115_v49 = vsub.f32 %v107_v42, %v114_v48 }
 0x223   :  { %117 = vst.msk [vmem:[#allocation2] sm:$0x3] %vm116_vm1, %v115_v49 }
 0x224   :  { %128 = dma.vmem_to_hbm [thread:$0]  %s124_s3, 32, %s126_s4, [#allocation3]  }
 0x225   :  { %165 = dma.done.wait [#allocation3], 32  }
 0x226   :  { %166 = vsyncadd [#allocation3], 4294967264 }
 0x227   :  { %133 = vsyncpa [#allocation3], 1 }

</bundles_post_ra>
